<compile_context>
chip_gen: v5e
topology: v5e:2x2
jax: 0.10.0
libtpu: 0.0.40
codegen_flags: <defaults>
</compile_context>

<pallas_src>
import functools

import jax
import jax.numpy as jnp
from jax.experimental import pallas as pl
from jax.experimental.pallas import tpu as pltpu


def _sliding_sum_valid(a, win, axis):
    """Valid sliding-window sum: out[i] = sum_{j<win} a[i+j] along `axis`.

    Output extent along `axis` is a.shape[axis] - win + 1.  Uses a
    power-of-two (prefix-doubling) decomposition -> O(log win) shift-adds.
    """
    L = a.shape[axis]

    def sl(x, start, length):
        idx = [slice(None)] * x.ndim
        idx[axis] = slice(start, start + length)
        return x[tuple(idx)]

    # pows[j][i] = sum of a[i : i + 2**j] along `axis`.
    pows = [a]
    span = 1
    while span * 2 <= win:
        prev = pows[-1]
        span *= 2
        length = L - span + 1
        pows.append(sl(prev, 0, length) + sl(prev, span // 2, length))

    # Greedy (== binary) decomposition of `win`, largest power first.
    result = None
    covered = 0
    for j in range(len(pows) - 1, -1, -1):
        p = 1 << j
        if covered + p > win:
            continue
        if result is None:
            result = sl(pows[j], 0, L - p + 1)
        else:
            length = L - (covered + p) + 1
            result = sl(result, 0, length) + sl(pows[j], covered, length)
        covered += p
    return result


def _box_filter_valid(a, win):
    """Mean over a win x win window, valid region only (== the cropped
    scipy.ndimage.uniform_filter output that skimage's SSIM averages)."""
    s = _sliding_sum_valid(a, win, axis=1)   # lanes (width) first
    s = _sliding_sum_valid(s, win, axis=0)   # then sublanes (height)
    return s * (1.0 / float(win * win))


def _ssim_kernel(pred_ref, target_ref, out_ref, *, win, c1, c2, cov_norm):
    x = target_ref[...].astype(jnp.float32)   # im1 (skimage argument order)
    y = pred_ref[...].astype(jnp.float32)     # im2
    H, W = x.shape
    hv = H - win + 1
    wv = W - win + 1

    ux = _box_filter_valid(x, win)
    uy = _box_filter_valid(y, win)
    uxx = _box_filter_valid(x * x, win)
    uyy = _box_filter_valid(y * y, win)
    uxy = _box_filter_valid(x * y, win)

    vx = cov_norm * (uxx - ux * ux)
    vy = cov_norm * (uyy - uy * uy)
    vxy = cov_norm * (uxy - ux * uy)

    a1 = 2.0 * ux * uy + c1
    a2 = 2.0 * vxy + c2
    b1 = ux * ux + uy * uy + c1
    b2 = vx + vy + c2
    s_map = (a1 * a2) / (b1 * b2)

    # Single final reduction to a scalar (mean over the valid/cropped region).
    out_ref[...] = jnp.sum(s_map, keepdims=True) * jnp.float32(1.0 / (hv * wv))


def ssim_loss(pred, target, *, win_size=25, k1=0.01, k2=0.03, data_range=2.0):
    """Pallas equivalent of SSIMLoss.forward:
        ssim(target[0, 0, :, :], pred[0, 0, :, :], win_size=25)
    (uniform window, sample covariance, mean over the valid region).
    """
    # TODO(synk): the reference's `ssim` import is unresolved; data_range=2.0
    # mirrors legacy skimage behaviour for float inputs — override if needed.
    assert pred.shape == target.shape and pred.ndim == 4
    _, _, H, W = pred.shape
    assert min(H, W) >= win_size, "win_size exceeds image extent"

    c1 = (k1 * data_range) ** 2
    c2 = (k2 * data_range) ** 2
    npix = win_size * win_size
    cov_norm = npix / (npix - 1.0)   # skimage use_sample_covariance=True

    kernel = functools.partial(
        _ssim_kernel, win=win_size, c1=c1, c2=c2, cov_norm=cov_norm)

    out = pl.pallas_call(
        kernel,
        out_shape=jax.ShapeDtypeStruct((1, 1), jnp.float32),
        grid_spec=pltpu.PrefetchScalarGridSpec(
            num_scalar_prefetch=0,
            grid=(1,),
            in_specs=[
                # Select [0, 0, :, :] directly via the BlockSpec (leading dims
                # squeezed) — only that slice is DMA'd, in its native dtype.
                pl.BlockSpec((None, None, H, W), lambda i: (0, 0, 0, 0)),
                pl.BlockSpec((None, None, H, W), lambda i: (0, 0, 0, 0)),
            ],
            out_specs=pl.BlockSpec((1, 1), lambda i: (0, 0)),
        ),
        compiler_params=pltpu.CompilerParams(
            dimension_semantics=("arbitrary",),
        ),
    )(pred, target)
    return out[0, 0]


def _ssim_reference(pred, target, *, win_size=25, k1=0.01, k2=0.03,
                    data_range=2.0):
    """Pure-JAX reference (integral-image box filter)."""
    x = target[0, 0].astype(jnp.float32)
    y = pred[0, 0].astype(jnp.float32)
    win = win_size
    npix = win * win

    def box(a):
        c = jnp.cumsum(jnp.cumsum(a, axis=0), axis=1)
        c = jnp.pad(c, ((1, 0), (1, 0)))
        return (c[win:, win:] - c[:-win, win:] - c[win:, :-win]
                + c[:-win, :-win]) / npix

    ux, uy = box(x), box(y)
    uxx, uyy, uxy = box(x * x), box(y * y), box(x * y)
    cov_norm = npix / (npix - 1.0)
    vx = cov_norm * (uxx - ux * ux)
    vy = cov_norm * (uyy - uy * uy)
    vxy = cov_norm * (uxy - ux * uy)
    c1 = (k1 * data_range) ** 2
    c2 = (k2 * data_range) ** 2
    s = ((2 * ux * uy + c1) * (2 * vxy + c2)) / (
        (ux * ux + uy * uy + c1) * (vx + vy + c2))
    return jnp.mean(s)


if __name__ == "__main__":
    key = jax.random.PRNGKey(0)
    ka, kb = jax.random.split(key)
    # NCHW inputs; spatial extent must be >= win_size (25), so use 32x32.
    pred = jax.random.uniform(ka, (2, 4, 32, 32), dtype=jnp.float32)
    target = pred + 0.05 * jax.random.normal(kb, (2, 4, 32, 32),
                                             dtype=jnp.float32)

    loss = jax.block_until_ready(ssim_loss(pred, target))

    ref = _ssim_reference(pred, target)
    assert jnp.allclose(loss, ref, rtol=1e-4, atol=1e-4), (loss, ref)

    print("KERNEL_OK")
</pallas_src>

<mosaic_0001>
module attributes {stable_mosaic.version = 11 : i64} {
  func.func @_ssim_kernel(%arg0: i32, %arg1: memref<1x1x32x32xf32, #tpu.memory_space<vmem>>, %arg2: memref<1x1x32x32xf32, #tpu.memory_space<vmem>>, %arg3: memref<1x1xf32, #tpu.memory_space<vmem>>) attributes {dimension_semantics = [#tpu.dimension_semantics<arbitrary>], iteration_bounds = array<i64: 1>, scalar_prefetch = 0 : i64, scratch_operands = 0 : i64, tpu.core_type = #tpu.core_type<tc>, window_params = [{transform_indices = @transform_0, window_bounds = array<i64: 1, 1, 32, 32>}, {transform_indices = @transform_1, window_bounds = array<i64: 1, 1, 32, 32>}, {pipeline_mode = #tpu.pipeline_mode<synchronous>, transform_indices = @transform_2, window_bounds = array<i64: 1, 1>}]} {
    %c0 = arith.constant 0 : index
    %c0_0 = arith.constant 0 : index
    %c0_1 = arith.constant 0 : index
    %c0_2 = arith.constant 0 : index
    %0 = vector.load %arg2[%c0, %c0_0, %c0_1, %c0_2] : memref<1x1x32x32xf32, #tpu.memory_space<vmem>>, vector<1x1x32x32xf32>
    %1 = vector.shape_cast %0 : vector<1x1x32x32xf32> to vector<32x32xf32>
    %c0_3 = arith.constant 0 : index
    %c0_4 = arith.constant 0 : index
    %c0_5 = arith.constant 0 : index
    %c0_6 = arith.constant 0 : index
    %2 = vector.load %arg1[%c0_3, %c0_4, %c0_5, %c0_6] : memref<1x1x32x32xf32, #tpu.memory_space<vmem>>, vector<1x1x32x32xf32>
    %3 = vector.shape_cast %2 : vector<1x1x32x32xf32> to vector<32x32xf32>
    %4 = vector.extract_strided_slice %1 {offsets = [0, 0], sizes = [32, 31], strides = [1, 1]} : vector<32x32xf32> to vector<32x31xf32>
    %5 = vector.extract_strided_slice %1 {offsets = [0, 1], sizes = [32, 31], strides = [1, 1]} : vector<32x32xf32> to vector<32x31xf32>
    %6 = arith.addf %4, %5 : vector<32x31xf32>
    %7 = vector.extract_strided_slice %6 {offsets = [0, 0], sizes = [32, 29], strides = [1, 1]} : vector<32x31xf32> to vector<32x29xf32>
    %8 = vector.extract_strided_slice %6 {offsets = [0, 2], sizes = [32, 29], strides = [1, 1]} : vector<32x31xf32> to vector<32x29xf32>
    %9 = arith.addf %7, %8 : vector<32x29xf32>
    %10 = vector.extract_strided_slice %9 {offsets = [0, 0], sizes = [32, 25], strides = [1, 1]} : vector<32x29xf32> to vector<32x25xf32>
    %11 = vector.extract_strided_slice %9 {offsets = [0, 4], sizes = [32, 25], strides = [1, 1]} : vector<32x29xf32> to vector<32x25xf32>
    %12 = arith.addf %10, %11 : vector<32x25xf32>
    %13 = vector.extract_strided_slice %12 {offsets = [0, 0], sizes = [32, 17], strides = [1, 1]} : vector<32x25xf32> to vector<32x17xf32>
    %14 = vector.extract_strided_slice %12 {offsets = [0, 8], sizes = [32, 17], strides = [1, 1]} : vector<32x25xf32> to vector<32x17xf32>
    %15 = arith.addf %13, %14 : vector<32x17xf32>
    %16 = vector.extract_strided_slice %15 {offsets = [0, 0], sizes = [32, 9], strides = [1, 1]} : vector<32x17xf32> to vector<32x9xf32>
    %17 = vector.extract_strided_slice %12 {offsets = [0, 16], sizes = [32, 9], strides = [1, 1]} : vector<32x25xf32> to vector<32x9xf32>
    %18 = arith.addf %16, %17 : vector<32x9xf32>
    %19 = vector.extract_strided_slice %18 {offsets = [0, 0], sizes = [32, 8], strides = [1, 1]} : vector<32x9xf32> to vector<32x8xf32>
    %20 = vector.extract_strided_slice %1 {offsets = [0, 24], sizes = [32, 8], strides = [1, 1]} : vector<32x32xf32> to vector<32x8xf32>
    %21 = arith.addf %19, %20 : vector<32x8xf32>
    %22 = vector.extract_strided_slice %21 {offsets = [0, 0], sizes = [31, 8], strides = [1, 1]} : vector<32x8xf32> to vector<31x8xf32>
    %23 = vector.extract_strided_slice %21 {offsets = [1, 0], sizes = [31, 8], strides = [1, 1]} : vector<32x8xf32> to vector<31x8xf32>
    %24 = arith.addf %22, %23 : vector<31x8xf32>
    %25 = vector.extract_strided_slice %24 {offsets = [0, 0], sizes = [29, 8], strides = [1, 1]} : vector<31x8xf32> to vector<29x8xf32>
    %26 = vector.extract_strided_slice %24 {offsets = [2, 0], sizes = [29, 8], strides = [1, 1]} : vector<31x8xf32> to vector<29x8xf32>
    %27 = arith.addf %25, %26 : vector<29x8xf32>
    %28 = vector.extract_strided_slice %27 {offsets = [0, 0], sizes = [25, 8], strides = [1, 1]} : vector<29x8xf32> to vector<25x8xf32>
    %29 = vector.extract_strided_slice %27 {offsets = [4, 0], sizes = [25, 8], strides = [1, 1]} : vector<29x8xf32> to vector<25x8xf32>
    %30 = arith.addf %28, %29 : vector<25x8xf32>
    %31 = vector.extract_strided_slice %30 {offsets = [0, 0], sizes = [17, 8], strides = [1, 1]} : vector<25x8xf32> to vector<17x8xf32>
    %32 = vector.extract_strided_slice %30 {offsets = [8, 0], sizes = [17, 8], strides = [1, 1]} : vector<25x8xf32> to vector<17x8xf32>
    %33 = arith.addf %31, %32 : vector<17x8xf32>
    %34 = vector.extract_strided_slice %33 {offsets = [0, 0], sizes = [9, 8], strides = [1, 1]} : vector<17x8xf32> to vector<9x8xf32>
    %35 = vector.extract_strided_slice %30 {offsets = [16, 0], sizes = [9, 8], strides = [1, 1]} : vector<25x8xf32> to vector<9x8xf32>
    %36 = arith.addf %34, %35 : vector<9x8xf32>
    %37 = vector.extract_strided_slice %36 {offsets = [0, 0], sizes = [8, 8], strides = [1, 1]} : vector<9x8xf32> to vector<8x8xf32>
    %38 = vector.extract_strided_slice %21 {offsets = [24, 0], sizes = [8, 8], strides = [1, 1]} : vector<32x8xf32> to vector<8x8xf32>
    %39 = arith.addf %37, %38 : vector<8x8xf32>
    %cst = arith.constant 1.600000e-03 : f32
    %40 = vector.broadcast %cst : f32 to vector<8x8xf32>
    %41 = arith.mulf %39, %40 : vector<8x8xf32>
    %42 = vector.extract_strided_slice %3 {offsets = [0, 0], sizes = [32, 31], strides = [1, 1]} : vector<32x32xf32> to vector<32x31xf32>
    %43 = vector.extract_strided_slice %3 {offsets = [0, 1], sizes = [32, 31], strides = [1, 1]} : vector<32x32xf32> to vector<32x31xf32>
    %44 = arith.addf %42, %43 : vector<32x31xf32>
    %45 = vector.extract_strided_slice %44 {offsets = [0, 0], sizes = [32, 29], strides = [1, 1]} : vector<32x31xf32> to vector<32x29xf32>
    %46 = vector.extract_strided_slice %44 {offsets = [0, 2], sizes = [32, 29], strides = [1, 1]} : vector<32x31xf32> to vector<32x29xf32>
    %47 = arith.addf %45, %46 : vector<32x29xf32>
    %48 = vector.extract_strided_slice %47 {offsets = [0, 0], sizes = [32, 25], strides = [1, 1]} : vector<32x29xf32> to vector<32x25xf32>
    %49 = vector.extract_strided_slice %47 {offsets = [0, 4], sizes = [32, 25], strides = [1, 1]} : vector<32x29xf32> to vector<32x25xf32>
    %50 = arith.addf %48, %49 : vector<32x25xf32>
    %51 = vector.extract_strided_slice %50 {offsets = [0, 0], sizes = [32, 17], strides = [1, 1]} : vector<32x25xf32> to vector<32x17xf32>
    %52 = vector.extract_strided_slice %50 {offsets = [0, 8], sizes = [32, 17], strides = [1, 1]} : vector<32x25xf32> to vector<32x17xf32>
    %53 = arith.addf %51, %52 : vector<32x17xf32>
    %54 = vector.extract_strided_slice %53 {offsets = [0, 0], sizes = [32, 9], strides = [1, 1]} : vector<32x17xf32> to vector<32x9xf32>
    %55 = vector.extract_strided_slice %50 {offsets = [0, 16], sizes = [32, 9], strides = [1, 1]} : vector<32x25xf32> to vector<32x9xf32>
    %56 = arith.addf %54, %55 : vector<32x9xf32>
    %57 = vector.extract_strided_slice %56 {offsets = [0, 0], sizes = [32, 8], strides = [1, 1]} : vector<32x9xf32> to vector<32x8xf32>
    %58 = vector.extract_strided_slice %3 {offsets = [0, 24], sizes = [32, 8], strides = [1, 1]} : vector<32x32xf32> to vector<32x8xf32>
    %59 = arith.addf %57, %58 : vector<32x8xf32>
    %60 = vector.extract_strided_slice %59 {offsets = [0, 0], sizes = [31, 8], strides = [1, 1]} : vector<32x8xf32> to vector<31x8xf32>
    %61 = vector.extract_strided_slice %59 {offsets = [1, 0], sizes = [31, 8], strides = [1, 1]} : vector<32x8xf32> to vector<31x8xf32>
    %62 = arith.addf %60, %61 : vector<31x8xf32>
    %63 = vector.extract_strided_slice %62 {offsets = [0, 0], sizes = [29, 8], strides = [1, 1]} : vector<31x8xf32> to vector<29x8xf32>
    %64 = vector.extract_strided_slice %62 {offsets = [2, 0], sizes = [29, 8], strides = [1, 1]} : vector<31x8xf32> to vector<29x8xf32>
    %65 = arith.addf %63, %64 : vector<29x8xf32>
    %66 = vector.extract_strided_slice %65 {offsets = [0, 0], sizes = [25, 8], strides = [1, 1]} : vector<29x8xf32> to vector<25x8xf32>
    %67 = vector.extract_strided_slice %65 {offsets = [4, 0], sizes = [25, 8], strides = [1, 1]} : vector<29x8xf32> to vector<25x8xf32>
    %68 = arith.addf %66, %67 : vector<25x8xf32>
    %69 = vector.extract_strided_slice %68 {offsets = [0, 0], sizes = [17, 8], strides = [1, 1]} : vector<25x8xf32> to vector<17x8xf32>
    %70 = vector.extract_strided_slice %68 {offsets = [8, 0], sizes = [17, 8], strides = [1, 1]} : vector<25x8xf32> to vector<17x8xf32>
    %71 = arith.addf %69, %70 : vector<17x8xf32>
    %72 = vector.extract_strided_slice %71 {offsets = [0, 0], sizes = [9, 8], strides = [1, 1]} : vector<17x8xf32> to vector<9x8xf32>
    %73 = vector.extract_strided_slice %68 {offsets = [16, 0], sizes = [9, 8], strides = [1, 1]} : vector<25x8xf32> to vector<9x8xf32>
    %74 = arith.addf %72, %73 : vector<9x8xf32>
    %75 = vector.extract_strided_slice %74 {offsets = [0, 0], sizes = [8, 8], strides = [1, 1]} : vector<9x8xf32> to vector<8x8xf32>
    %76 = vector.extract_strided_slice %59 {offsets = [24, 0], sizes = [8, 8], strides = [1, 1]} : vector<32x8xf32> to vector<8x8xf32>
    %77 = arith.addf %75, %76 : vector<8x8xf32>
    %cst_7 = arith.constant 1.600000e-03 : f32
    %78 = vector.broadcast %cst_7 : f32 to vector<8x8xf32>
    %79 = arith.mulf %77, %78 : vector<8x8xf32>
    %80 = arith.mulf %1, %1 : vector<32x32xf32>
    %81 = vector.extract_strided_slice %80 {offsets = [0, 0], sizes = [32, 31], strides = [1, 1]} : vector<32x32xf32> to vector<32x31xf32>
    %82 = vector.extract_strided_slice %80 {offsets = [0, 1], sizes = [32, 31], strides = [1, 1]} : vector<32x32xf32> to vector<32x31xf32>
    %83 = arith.addf %81, %82 : vector<32x31xf32>
    %84 = vector.extract_strided_slice %83 {offsets = [0, 0], sizes = [32, 29], strides = [1, 1]} : vector<32x31xf32> to vector<32x29xf32>
    %85 = vector.extract_strided_slice %83 {offsets = [0, 2], sizes = [32, 29], strides = [1, 1]} : vector<32x31xf32> to vector<32x29xf32>
    %86 = arith.addf %84, %85 : vector<32x29xf32>
    %87 = vector.extract_strided_slice %86 {offsets = [0, 0], sizes = [32, 25], strides = [1, 1]} : vector<32x29xf32> to vector<32x25xf32>
    %88 = vector.extract_strided_slice %86 {offsets = [0, 4], sizes = [32, 25], strides = [1, 1]} : vector<32x29xf32> to vector<32x25xf32>
    %89 = arith.addf %87, %88 : vector<32x25xf32>
    %90 = vector.extract_strided_slice %89 {offsets = [0, 0], sizes = [32, 17], strides = [1, 1]} : vector<32x25xf32> to vector<32x17xf32>
    %91 = vector.extract_strided_slice %89 {offsets = [0, 8], sizes = [32, 17], strides = [1, 1]} : vector<32x25xf32> to vector<32x17xf32>
    %92 = arith.addf %90, %91 : vector<32x17xf32>
    %93 = vector.extract_strided_slice %92 {offsets = [0, 0], sizes = [32, 9], strides = [1, 1]} : vector<32x17xf32> to vector<32x9xf32>
    %94 = vector.extract_strided_slice %89 {offsets = [0, 16], sizes = [32, 9], strides = [1, 1]} : vector<32x25xf32> to vector<32x9xf32>
    %95 = arith.addf %93, %94 : vector<32x9xf32>
    %96 = vector.extract_strided_slice %95 {offsets = [0, 0], sizes = [32, 8], strides = [1, 1]} : vector<32x9xf32> to vector<32x8xf32>
    %97 = vector.extract_strided_slice %80 {offsets = [0, 24], sizes = [32, 8], strides = [1, 1]} : vector<32x32xf32> to vector<32x8xf32>
    %98 = arith.addf %96, %97 : vector<32x8xf32>
    %99 = vector.extract_strided_slice %98 {offsets = [0, 0], sizes = [31, 8], strides = [1, 1]} : vector<32x8xf32> to vector<31x8xf32>
    %100 = vector.extract_strided_slice %98 {offsets = [1, 0], sizes = [31, 8], strides = [1, 1]} : vector<32x8xf32> to vector<31x8xf32>
    %101 = arith.addf %99, %100 : vector<31x8xf32>
    %102 = vector.extract_strided_slice %101 {offsets = [0, 0], sizes = [29, 8], strides = [1, 1]} : vector<31x8xf32> to vector<29x8xf32>
    %103 = vector.extract_strided_slice %101 {offsets = [2, 0], sizes = [29, 8], strides = [1, 1]} : vector<31x8xf32> to vector<29x8xf32>
    %104 = arith.addf %102, %103 : vector<29x8xf32>
    %105 = vector.extract_strided_slice %104 {offsets = [0, 0], sizes = [25, 8], strides = [1, 1]} : vector<29x8xf32> to vector<25x8xf32>
    %106 = vector.extract_strided_slice %104 {offsets = [4, 0], sizes = [25, 8], strides = [1, 1]} : vector<29x8xf32> to vector<25x8xf32>
    %107 = arith.addf %105, %106 : vector<25x8xf32>
    %108 = vector.extract_strided_slice %107 {offsets = [0, 0], sizes = [17, 8], strides = [1, 1]} : vector<25x8xf32> to vector<17x8xf32>
    %109 = vector.extract_strided_slice %107 {offsets = [8, 0], sizes = [17, 8], strides = [1, 1]} : vector<25x8xf32> to vector<17x8xf32>
    %110 = arith.addf %108, %109 : vector<17x8xf32>
    %111 = vector.extract_strided_slice %110 {offsets = [0, 0], sizes = [9, 8], strides = [1, 1]} : vector<17x8xf32> to vector<9x8xf32>
    %112 = vector.extract_strided_slice %107 {offsets = [16, 0], sizes = [9, 8], strides = [1, 1]} : vector<25x8xf32> to vector<9x8xf32>
    %113 = arith.addf %111, %112 : vector<9x8xf32>
    %114 = vector.extract_strided_slice %113 {offsets = [0, 0], sizes = [8, 8], strides = [1, 1]} : vector<9x8xf32> to vector<8x8xf32>
    %115 = vector.extract_strided_slice %98 {offsets = [24, 0], sizes = [8, 8], strides = [1, 1]} : vector<32x8xf32> to vector<8x8xf32>
    %116 = arith.addf %114, %115 : vector<8x8xf32>
    %cst_8 = arith.constant 1.600000e-03 : f32
    %117 = vector.broadcast %cst_8 : f32 to vector<8x8xf32>
    %118 = arith.mulf %116, %117 : vector<8x8xf32>
    %119 = arith.mulf %3, %3 : vector<32x32xf32>
    %120 = vector.extract_strided_slice %119 {offsets = [0, 0], sizes = [32, 31], strides = [1, 1]} : vector<32x32xf32> to vector<32x31xf32>
    %121 = vector.extract_strided_slice %119 {offsets = [0, 1], sizes = [32, 31], strides = [1, 1]} : vector<32x32xf32> to vector<32x31xf32>
    %122 = arith.addf %120, %121 : vector<32x31xf32>
    %123 = vector.extract_strided_slice %122 {offsets = [0, 0], sizes = [32, 29], strides = [1, 1]} : vector<32x31xf32> to vector<32x29xf32>
    %124 = vector.extract_strided_slice %122 {offsets = [0, 2], sizes = [32, 29], strides = [1, 1]} : vector<32x31xf32> to vector<32x29xf32>
    %125 = arith.addf %123, %124 : vector<32x29xf32>
    %126 = vector.extract_strided_slice %125 {offsets = [0, 0], sizes = [32, 25], strides = [1, 1]} : vector<32x29xf32> to vector<32x25xf32>
    %127 = vector.extract_strided_slice %125 {offsets = [0, 4], sizes = [32, 25], strides = [1, 1]} : vector<32x29xf32> to vector<32x25xf32>
    %128 = arith.addf %126, %127 : vector<32x25xf32>
    %129 = vector.extract_strided_slice %128 {offsets = [0, 0], sizes = [32, 17], strides = [1, 1]} : vector<32x25xf32> to vector<32x17xf32>
    %130 = vector.extract_strided_slice %128 {offsets = [0, 8], sizes = [32, 17], strides = [1, 1]} : vector<32x25xf32> to vector<32x17xf32>
    %131 = arith.addf %129, %130 : vector<32x17xf32>
    %132 = vector.extract_strided_slice %131 {offsets = [0, 0], sizes = [32, 9], strides = [1, 1]} : vector<32x17xf32> to vector<32x9xf32>
    %133 = vector.extract_strided_slice %128 {offsets = [0, 16], sizes = [32, 9], strides = [1, 1]} : vector<32x25xf32> to vector<32x9xf32>
    %134 = arith.addf %132, %133 : vector<32x9xf32>
    %135 = vector.extract_strided_slice %134 {offsets = [0, 0], sizes = [32, 8], strides = [1, 1]} : vector<32x9xf32> to vector<32x8xf32>
    %136 = vector.extract_strided_slice %119 {offsets = [0, 24], sizes = [32, 8], strides = [1, 1]} : vector<32x32xf32> to vector<32x8xf32>
    %137 = arith.addf %135, %136 : vector<32x8xf32>
    %138 = vector.extract_strided_slice %137 {offsets = [0, 0], sizes = [31, 8], strides = [1, 1]} : vector<32x8xf32> to vector<31x8xf32>
    %139 = vector.extract_strided_slice %137 {offsets = [1, 0], sizes = [31, 8], strides = [1, 1]} : vector<32x8xf32> to vector<31x8xf32>
    %140 = arith.addf %138, %139 : vector<31x8xf32>
    %141 = vector.extract_strided_slice %140 {offsets = [0, 0], sizes = [29, 8], strides = [1, 1]} : vector<31x8xf32> to vector<29x8xf32>
    %142 = vector.extract_strided_slice %140 {offsets = [2, 0], sizes = [29, 8], strides = [1, 1]} : vector<31x8xf32> to vector<29x8xf32>
    %143 = arith.addf %141, %142 : vector<29x8xf32>
    %144 = vector.extract_strided_slice %143 {offsets = [0, 0], sizes = [25, 8], strides = [1, 1]} : vector<29x8xf32> to vector<25x8xf32>
    %145 = vector.extract_strided_slice %143 {offsets = [4, 0], sizes = [25, 8], strides = [1, 1]} : vector<29x8xf32> to vector<25x8xf32>
    %146 = arith.addf %144, %145 : vector<25x8xf32>
    %147 = vector.extract_strided_slice %146 {offsets = [0, 0], sizes = [17, 8], strides = [1, 1]} : vector<25x8xf32> to vector<17x8xf32>
    %148 = vector.extract_strided_slice %146 {offsets = [8, 0], sizes = [17, 8], strides = [1, 1]} : vector<25x8xf32> to vector<17x8xf32>
    %149 = arith.addf %147, %148 : vector<17x8xf32>
    %150 = vector.extract_strided_slice %149 {offsets = [0, 0], sizes = [9, 8], strides = [1, 1]} : vector<17x8xf32> to vector<9x8xf32>
    %151 = vector.extract_strided_slice %146 {offsets = [16, 0], sizes = [9, 8], strides = [1, 1]} : vector<25x8xf32> to vector<9x8xf32>
    %152 = arith.addf %150, %151 : vector<9x8xf32>
    %153 = vector.extract_strided_slice %152 {offsets = [0, 0], sizes = [8, 8], strides = [1, 1]} : vector<9x8xf32> to vector<8x8xf32>
    %154 = vector.extract_strided_slice %137 {offsets = [24, 0], sizes = [8, 8], strides = [1, 1]} : vector<32x8xf32> to vector<8x8xf32>
    %155 = arith.addf %153, %154 : vector<8x8xf32>
    %cst_9 = arith.constant 1.600000e-03 : f32
    %156 = vector.broadcast %cst_9 : f32 to vector<8x8xf32>
    %157 = arith.mulf %155, %156 : vector<8x8xf32>
    %158 = arith.mulf %1, %3 : vector<32x32xf32>
    %159 = vector.extract_strided_slice %158 {offsets = [0, 0], sizes = [32, 31], strides = [1, 1]} : vector<32x32xf32> to vector<32x31xf32>
    %160 = vector.extract_strided_slice %158 {offsets = [0, 1], sizes = [32, 31], strides = [1, 1]} : vector<32x32xf32> to vector<32x31xf32>
    %161 = arith.addf %159, %160 : vector<32x31xf32>
    %162 = vector.extract_strided_slice %161 {offsets = [0, 0], sizes = [32, 29], strides = [1, 1]} : vector<32x31xf32> to vector<32x29xf32>
    %163 = vector.extract_strided_slice %161 {offsets = [0, 2], sizes = [32, 29], strides = [1, 1]} : vector<32x31xf32> to vector<32x29xf32>
    %164 = arith.addf %162, %163 : vector<32x29xf32>
    %165 = vector.extract_strided_slice %164 {offsets = [0, 0], sizes = [32, 25], strides = [1, 1]} : vector<32x29xf32> to vector<32x25xf32>
    %166 = vector.extract_strided_slice %164 {offsets = [0, 4], sizes = [32, 25], strides = [1, 1]} : vector<32x29xf32> to vector<32x25xf32>
    %167 = arith.addf %165, %166 : vector<32x25xf32>
    %168 = vector.extract_strided_slice %167 {offsets = [0, 0], sizes = [32, 17], strides = [1, 1]} : vector<32x25xf32> to vector<32x17xf32>
    %169 = vector.extract_strided_slice %167 {offsets = [0, 8], sizes = [32, 17], strides = [1, 1]} : vector<32x25xf32> to vector<32x17xf32>
    %170 = arith.addf %168, %169 : vector<32x17xf32>
    %171 = vector.extract_strided_slice %170 {offsets = [0, 0], sizes = [32, 9], strides = [1, 1]} : vector<32x17xf32> to vector<32x9xf32>
    %172 = vector.extract_strided_slice %167 {offsets = [0, 16], sizes = [32, 9], strides = [1, 1]} : vector<32x25xf32> to vector<32x9xf32>
    %173 = arith.addf %171, %172 : vector<32x9xf32>
    %174 = vector.extract_strided_slice %173 {offsets = [0, 0], sizes = [32, 8], strides = [1, 1]} : vector<32x9xf32> to vector<32x8xf32>
    %175 = vector.extract_strided_slice %158 {offsets = [0, 24], sizes = [32, 8], strides = [1, 1]} : vector<32x32xf32> to vector<32x8xf32>
    %176 = arith.addf %174, %175 : vector<32x8xf32>
    %177 = vector.extract_strided_slice %176 {offsets = [0, 0], sizes = [31, 8], strides = [1, 1]} : vector<32x8xf32> to vector<31x8xf32>
    %178 = vector.extract_strided_slice %176 {offsets = [1, 0], sizes = [31, 8], strides = [1, 1]} : vector<32x8xf32> to vector<31x8xf32>
    %179 = arith.addf %177, %178 : vector<31x8xf32>
    %180 = vector.extract_strided_slice %179 {offsets = [0, 0], sizes = [29, 8], strides = [1, 1]} : vector<31x8xf32> to vector<29x8xf32>
    %181 = vector.extract_strided_slice %179 {offsets = [2, 0], sizes = [29, 8], strides = [1, 1]} : vector<31x8xf32> to vector<29x8xf32>
    %182 = arith.addf %180, %181 : vector<29x8xf32>
    %183 = vector.extract_strided_slice %182 {offsets = [0, 0], sizes = [25, 8], strides = [1, 1]} : vector<29x8xf32> to vector<25x8xf32>
    %184 = vector.extract_strided_slice %182 {offsets = [4, 0], sizes = [25, 8], strides = [1, 1]} : vector<29x8xf32> to vector<25x8xf32>
    %185 = arith.addf %183, %184 : vector<25x8xf32>
    %186 = vector.extract_strided_slice %185 {offsets = [0, 0], sizes = [17, 8], strides = [1, 1]} : vector<25x8xf32> to vector<17x8xf32>
    %187 = vector.extract_strided_slice %185 {offsets = [8, 0], sizes = [17, 8], strides = [1, 1]} : vector<25x8xf32> to vector<17x8xf32>
    %188 = arith.addf %186, %187 : vector<17x8xf32>
    %189 = vector.extract_strided_slice %188 {offsets = [0, 0], sizes = [9, 8], strides = [1, 1]} : vector<17x8xf32> to vector<9x8xf32>
    %190 = vector.extract_strided_slice %185 {offsets = [16, 0], sizes = [9, 8], strides = [1, 1]} : vector<25x8xf32> to vector<9x8xf32>
    %191 = arith.addf %189, %190 : vector<9x8xf32>
    %192 = vector.extract_strided_slice %191 {offsets = [0, 0], sizes = [8, 8], strides = [1, 1]} : vector<9x8xf32> to vector<8x8xf32>
    %193 = vector.extract_strided_slice %176 {offsets = [24, 0], sizes = [8, 8], strides = [1, 1]} : vector<32x8xf32> to vector<8x8xf32>
    %194 = arith.addf %192, %193 : vector<8x8xf32>
    %cst_10 = arith.constant 1.600000e-03 : f32
    %195 = vector.broadcast %cst_10 : f32 to vector<8x8xf32>
    %196 = arith.mulf %194, %195 : vector<8x8xf32>
    %197 = arith.mulf %41, %41 : vector<8x8xf32>
    %198 = arith.subf %118, %197 : vector<8x8xf32>
    %cst_11 = arith.constant 1.00160253 : f32
    %199 = vector.broadcast %cst_11 : f32 to vector<8x8xf32>
    %200 = arith.mulf %199, %198 : vector<8x8xf32>
    %201 = arith.mulf %79, %79 : vector<8x8xf32>
    %202 = arith.subf %157, %201 : vector<8x8xf32>
    %cst_12 = arith.constant 1.00160253 : f32
    %203 = vector.broadcast %cst_12 : f32 to vector<8x8xf32>
    %204 = arith.mulf %203, %202 : vector<8x8xf32>
    %205 = arith.mulf %41, %79 : vector<8x8xf32>
    %206 = arith.subf %196, %205 : vector<8x8xf32>
    %cst_13 = arith.constant 1.00160253 : f32
    %207 = vector.broadcast %cst_13 : f32 to vector<8x8xf32>
    %208 = arith.mulf %207, %206 : vector<8x8xf32>
    %cst_14 = arith.constant 2.000000e+00 : f32
    %209 = vector.broadcast %cst_14 : f32 to vector<8x8xf32>
    %210 = arith.mulf %209, %41 : vector<8x8xf32>
    %211 = arith.mulf %210, %79 : vector<8x8xf32>
    %cst_15 = arith.constant 4.000000e-04 : f32
    %212 = vector.broadcast %cst_15 : f32 to vector<8x8xf32>
    %213 = arith.addf %211, %212 : vector<8x8xf32>
    %cst_16 = arith.constant 2.000000e+00 : f32
    %214 = vector.broadcast %cst_16 : f32 to vector<8x8xf32>
    %215 = arith.mulf %214, %208 : vector<8x8xf32>
    %cst_17 = arith.constant 3.600000e-03 : f32
    %216 = vector.broadcast %cst_17 : f32 to vector<8x8xf32>
    %217 = arith.addf %215, %216 : vector<8x8xf32>
    %218 = arith.mulf %41, %41 : vector<8x8xf32>
    %219 = arith.mulf %79, %79 : vector<8x8xf32>
    %220 = arith.addf %218, %219 : vector<8x8xf32>
    %cst_18 = arith.constant 4.000000e-04 : f32
    %221 = vector.broadcast %cst_18 : f32 to vector<8x8xf32>
    %222 = arith.addf %220, %221 : vector<8x8xf32>
    %223 = arith.addf %200, %204 : vector<8x8xf32>
    %cst_19 = arith.constant 3.600000e-03 : f32
    %224 = vector.broadcast %cst_19 : f32 to vector<8x8xf32>
    %225 = arith.addf %223, %224 : vector<8x8xf32>
    %226 = arith.mulf %213, %217 : vector<8x8xf32>
    %227 = arith.mulf %222, %225 : vector<8x8xf32>
    %228 = arith.divf %226, %227 : vector<8x8xf32>
    %229 = vector.shape_cast %228 : vector<8x8xf32> to vector<1x8x8xf32>
    %cst_20 = arith.constant dense<0.000000e+00> : vector<1xf32>
    %230 = vector.multi_reduction <add>, %229, %cst_20 [1, 2] : vector<1x8x8xf32> to vector<1xf32>
    %231 = vector.shape_cast %230 : vector<1xf32> to vector<1x1x1xf32>
    %232 = vector.extract %231[0, 0, 0] : f32 from vector<1x1x1xf32>
    %233 = vector.broadcast %232 : f32 to vector<1x1xf32>
    %cst_21 = arith.constant 1.562500e-02 : f32
    %234 = vector.broadcast %cst_21 : f32 to vector<1x1xf32>
    %235 = arith.mulf %233, %234 : vector<1x1xf32>
    %c0_22 = arith.constant 0 : index
    %c0_23 = arith.constant 0 : index
    %236 = vector.load %arg3[%c0_22, %c0_23] : memref<1x1xf32, #tpu.memory_space<vmem>>, vector<1x1xf32>
    tpu.vector_store %arg3[%c0_22, %c0_23], %235 {strides = array<i32>} : memref<1x1xf32, #tpu.memory_space<vmem>>, vector<1x1xf32>,
    return
  }
  func.func @transform_0(%arg0: i32) -> (i32, i32, i32, i32) {
    %c0_i32 = arith.constant 0 : i32
    %c0_i32_0 = arith.constant 0 : i32
    %c0_i32_1 = arith.constant 0 : i32
    %c0_i32_2 = arith.constant 0 : i32
    %c0_i32_3 = arith.constant 0 : i32
    return %c0_i32, %c0_i32_0, %c0_i32_1, %c0_i32_2 : i32, i32, i32, i32
  }
  func.func @transform_1(%arg0: i32) -> (i32, i32, i32, i32) {
    %c0_i32 = arith.constant 0 : i32
    %c0_i32_0 = arith.constant 0 : i32
    %c0_i32_1 = arith.constant 0 : i32
    %c0_i32_2 = arith.constant 0 : i32
    %c0_i32_3 = arith.constant 0 : i32
    return %c0_i32, %c0_i32_0, %c0_i32_1, %c0_i32_2 : i32, i32, i32, i32
  }
  func.func @transform_2(%arg0: i32) -> (i32, i32) {
    %c0_i32 = arith.constant 0 : i32
    %c0_i32_0 = arith.constant 0 : i32
    %c0_i32_1 = arith.constant 0 : i32
    return %c0_i32, %c0_i32_0 : i32, i32
  }
}

</mosaic_0001>

<bundles_post_ra>
// kernel: tpu_custom_call.1
= control target key start
LH: loop header
LB: loop body
LE: loop exit
PB: predicated region body
PF: predicated region fallthrough
CT: control target
= control target key end

     0   :  { %7 = vsyncpa [#allocation3], 0  ;;  %s1681_s0 = inlined_call_operand.hbm [shape: f32[2,4,32,32], index: 0, kind: input, shape index: {}]   ;;  %s1682_s1 = inlined_call_operand.hbm [shape: f32[2,4,32,32], index: 1, kind: input, shape index: {}]   ;;  %s1683_s2 = inlined_call_operand.hbm [shape: f32[1,1], index: 2, kind: output, shape index: {}]  }
   0x1   :  { %8 = vsyncpa [#allocation6], 0 }
   0x2   :  { %9 = vsyncpa [#allocation4], 0  ;;  %s14_s11 = sshll.u32 %s1681_s0, 4  ;;  %s1083_s12 = smov [#allocation2]   ;;  %s15_s11 = int_to_ptr.hbm [resolvable:$true] %s14_s11 }
   0x3   :  { %s16_s13 = sshll.u32 %s1083_s12, 4  ;;  %s27_s16 = sshll.u32 %s1682_s1, 4  ;;  %s17_s13 = int_to_ptr.vmem [resolvable:$true] %s16_s13  ;;  %s28_s16 = int_to_ptr.hbm [resolvable:$true] %s27_s16 }
   0x4   :  { %s1084_s17 = smov 128   ;;  %s1085_s18 = smov 8  }
   0x5   :  { %22 = dma.hbm_to_vmem [thread:$0]  %s15_s11, 512, %s17_s13, [#allocation3], %s1084_s17, %s1084_s17, %s1085_s18  }
   0x6   :  { %s1086_s19 = smov [#allocation5]  }
   0x7   :  { %s29_s20 = sshll.u32 %s1086_s19, 4  ;;  %s30_s20 = int_to_ptr.vmem [resolvable:$true] %s29_s20 }
   0x8   :  { %35 = dma.hbm_to_vmem [thread:$0]  %s28_s16, 512, %s30_s20, [#allocation6], %s1084_s17, %s1084_s17, %s1085_s18  }
   0x9   :  { %1077 = dma.done.wait [#allocation3], 512  }
   0xa   :  { %1078 = vsyncadd [#allocation3], 4294966784 }
   0xb   :  { %1079 = dma.done.wait [#allocation6], 512  }
   0xc   :  { %1080 = vsyncadd [#allocation6], 4294966784  ;;  %v46_v0 = vld [vmem:[#allocation5 + $0x10] sm:$0xff]  ;;  %v44_v1 = vld [vmem:[#allocation5] sm:$0xff]  ;;  %s1087_s0 = smov 127   ;;  %s1088_s1 = smov 104  }
   0xd   :  { %60 = vrot.lane.b32.xlu1 %v46_v0, %s1087_s0  ;;  %56 = vrot.lane.b32.xlu0 %v44_v1, %s1087_s0  ;;  %v1117_v2 = vld [vmem:[#allocation2 + $0x10] sm:$0xff]  ;;  %v47_v3 = vld [vmem:[#allocation5 + $0x18] sm:$0xff]  ;;  %v45_v4 = vld [vmem:[#allocation5 + $0x8] sm:$0xff]  ;;  %v1133_v9 = vmul.f32 %v44_v1, %v44_v1  ;;  %v1147_v12 = vmul.f32 %v46_v0, %v46_v0  ;;  %s1089_s21 = smov 126   ;;  %s1090_s22 = smov 124   ;;  %vm168_vm0 = vcmask 1046528  }
   0xe   :  { %234 = vrot.lane.b32.xlu2 %v1117_v2, %s1087_s0  ;;  %v1121_v5 = vmul.f32 %v45_v4, %v45_v4  ;;  %v49_v6 = vld [vmem:[#allocation2 + $0x8] sm:$0xff]  ;;  %v48_v7 = vld [vmem:[#allocation2] sm:$0xff]  ;;  %v1135_v10 = vld [vmem:[#allocation2 + $0x18] sm:$0xff]  ;;  %v1149_v13 = vmul.f32 %v47_v3, %v47_v3  ;;  %v1152_v14 = vmul.f32 %v1117_v2, %v46_v0  ;;  %v1164_v16 = vmul.f32 %v1117_v2, %v1117_v2  ;;  %s1091_s23 = smov 120   ;;  %s1092_s24 = smov 112  }
   0xf   :  { %v1127_v8 = vmul.f32 %v48_v7, %v48_v7  ;;  %v1139_v11 = vmul.f32 %v1135_v10, %v1135_v10  ;;  %v1160_v15 = vmul.f32 %v49_v6, %v49_v6  ;;  %v1171_v17 = vmul.f32 %v48_v7, %v44_v1  ;;  %s1093_s25 = smov [#allocation7]   ;;  %s979_s29 = sshll.u32 %s1683_s2, 4  ;;  %s980_s29 = int_to_ptr.hbm [resolvable:$true] %s979_s29 }
  0x10   :  { %v1173_v18 = vmul.f32 %v49_v6, %v45_v4  ;;  %v1181_v19 = vmul.f32 %v1135_v10, %v47_v3  ;;  %vm188_vm1 = vcmask 1045504   ;;  %vm208_vm2 = vcmask 1043456   ;;  %s977_s26 = sshll.u32 %s1093_s25, 4  ;;  %s978_s26 = int_to_ptr.vmem [resolvable:$true] %s977_s26 }
  0x11   :  { %vm957_vm7 = vcmask 64512   ;;  %vm970_vm8 = vcmask 0  }
  0x15   :  { %62 = vrot.lane.b32.xlu1 %v47_v3, %s1087_s0  ;;  %58 = vrot.lane.b32.xlu0 %v45_v4, %s1087_s0 }
  0x16   :  { %407 = vrot.lane.b32.xlu2 %v1121_v5, %s1087_s0 }
  0x1d   :  { %232 = vrot.lane.b32.xlu1 %v49_v6, %s1087_s0  ;;  %230 = vrot.lane.b32.xlu0 %v48_v7, %s1087_s0 }
  0x1e   :  { %580 = vrot.lane.b32.xlu2 %v1127_v8, %s1087_s0 }
  0x25   :  { %236 = vrot.lane.b32.xlu0 %v1135_v10, %s1087_s0  ;;  %405 = vrot.lane.b32.xlu1 %v1133_v9, %s1087_s0 }
  0x26   :  { %586 = vrot.lane.b32.xlu2 %v1139_v11, %s1087_s0 }
  0x2d   :  { %409 = vrot.lane.b32.xlu0 %v1147_v12, %s1087_s0  ;;  %411 = vrot.lane.b32.xlu1 %v1149_v13, %s1087_s0 }
  0x2e   :  { %759 = vrot.lane.b32.xlu2 %v1152_v14, %s1087_s0 }
  0x35   :  { %582 = vrot.lane.b32.xlu0 %v1160_v15, %s1087_s0  ;;  %584 = vrot.lane.b32.xlu1 %v1164_v16, %s1087_s0 }
  0x36   :  { %152 = vrot.lane.b32.xlu2 %v46_v0, %s1088_s1 }
  0x3d   :  { %755 = vrot.lane.b32.xlu0 %v1171_v17, %s1087_s0  ;;  %757 = vrot.lane.b32.xlu1 %v1173_v18, %s1087_s0 }
  0x3e   :  { %324 = vrot.lane.b32.xlu2 %v49_v6, %s1088_s1 }
  0x45   :  { %761 = vrot.lane.b32.xlu0 %v1181_v19, %s1087_s0  ;;  %150 = vrot.lane.b32.xlu1 %v45_v4, %s1088_s1 }
  0x4d   :  { %148 = vrot.lane.b32.xlu0 %v44_v1, %s1088_s1  ;;  %322 = vrot.lane.b32.xlu1 %v48_v7, %s1088_s1 }
  0x55   :  { %154 = vrot.lane.b32.xlu0 %v47_v3, %s1088_s1 }
  0x68   :  { %v235_v20 = vpop.permute.xlu2 %234 }
  0x69   :  { %v1198_v26 = vadd.f32 %v235_v20, %v1117_v2 }
  0x70   :  { %v408_v25 = vpop.permute.xlu2 %407 }
  0x71   :  { %v1211_v31 = vadd.f32 %v408_v25, %v1121_v5 }
  0x78   :  { %v581_v32 = vpop.permute.xlu2 %580 }
  0x79   :  { %v1224_v37 = vadd.f32 %v581_v32, %v1127_v8 }
  0x7f   :  { %v61_v21 = vpop.permute.xlu1 %60  ;;  %v57_v22 = vpop.permute.xlu0 %56 }
  0x80   :  { %v1189_v23 = vadd.f32 %v61_v21, %v46_v0  ;;  %v1191_v24 = vadd.f32 %v57_v22, %v44_v1  ;;  %v587_v42 = vpop.permute.xlu2 %586 }
  0x81   :  { %v1236_v43 = vadd.f32 %v587_v42, %v1139_v11 }
  0x82   :  { %76 = vrot.lane.b32.xlu2 %v1191_v24, %s1089_s21  ;;  %80 = vrot.lane.b32.xlu0 %v1189_v23, %s1089_s21 }
  0x87   :  { %v63_v27 = vpop.permute.xlu1 %62  ;;  %v59_v28 = vpop.permute.xlu0 %58 }
  0x88   :  { %v1200_v29 = vadd.f32 %v63_v27, %v47_v3  ;;  %v1202_v30 = vadd.f32 %v59_v28, %v45_v4  ;;  %v760_v48 = vpop.permute.xlu2 %759 }
  0x89   :  { %v1248_v49 = vadd.f32 %v760_v48, %v1152_v14 }
  0x8a   :  { %78 = vrot.lane.b32.xlu2 %v1202_v30, %s1089_s21  ;;  %254 = vrot.lane.b32.xlu0 %v1198_v26, %s1089_s21 }
  0x8b   :  { %82 = vrot.lane.b32.xlu1 %v1200_v29, %s1089_s21 }
  0x8f   :  { %v233_v33 = vpop.permute.xlu1 %232  ;;  %v231_v34 = vpop.permute.xlu0 %230 }
  0x90   :  { %v1213_v35 = vadd.f32 %v233_v33, %v49_v6  ;;  %v1215_v36 = vadd.f32 %v231_v34, %v48_v7  ;;  %v1283_v60 = vpop.permute.xlu2 %152 }
  0x92   :  { %252 = vrot.lane.b32.xlu2 %v1213_v35, %s1089_s21  ;;  %427 = vrot.lane.b32.xlu0 %v1211_v31, %s1089_s21 }
  0x93   :  { %250 = vrot.lane.b32.xlu1 %v1215_v36, %s1089_s21 }
  0x97   :  { %v237_v38 = vpop.permute.xlu0 %236  ;;  %v406_v39 = vpop.permute.xlu1 %405 }
  0x98   :  { %v1227_v40 = vadd.f32 %v237_v38, %v1135_v10  ;;  %v417_v41 = vadd.f32 %v406_v39, %v1133_v9  ;;  %v1289_v61 = vpop.permute.xlu2 %324 }
  0x9a   :  { %600 = vrot.lane.b32.xlu0 %v1224_v37, %s1089_s21  ;;  %425 = vrot.lane.b32.xlu2 %v417_v41, %s1089_s21 }
  0x9b   :  { %256 = vrot.lane.b32.xlu1 %v1227_v40, %s1089_s21 }
  0x9f   :  { %v410_v44 = vpop.permute.xlu0 %409  ;;  %v412_v45 = vpop.permute.xlu1 %411 }
  0xa0   :  { %v1239_v46 = vadd.f32 %v410_v44, %v1147_v12  ;;  %v420_v47 = vadd.f32 %v412_v45, %v1149_v13 }
  0xa2   :  { %606 = vrot.lane.b32.xlu0 %v1236_v43, %s1089_s21  ;;  %431 = vrot.lane.b32.xlu2 %v420_v47, %s1089_s21 }
  0xa3   :  { %429 = vrot.lane.b32.xlu1 %v1239_v46, %s1089_s21 }
  0xa7   :  { %v583_v50 = vpop.permute.xlu0 %582  ;;  %v585_v51 = vpop.permute.xlu1 %584 }
  0xa8   :  { %v1251_v52 = vadd.f32 %v583_v50, %v1160_v15  ;;  %v594_v53 = vadd.f32 %v585_v51, %v1164_v16 }
  0xaa   :  { %779 = vrot.lane.b32.xlu0 %v1248_v49, %s1089_s21  ;;  %604 = vrot.lane.b32.xlu2 %v594_v53, %s1089_s21 }
  0xab   :  { %602 = vrot.lane.b32.xlu1 %v1251_v52, %s1089_s21 }
  0xaf   :  { %v756_v54 = vpop.permute.xlu0 %755  ;;  %v758_v55 = vpop.permute.xlu1 %757 }
  0xb0   :  { %v1260_v56 = vadd.f32 %v756_v54, %v1171_v17  ;;  %v768_v57 = vadd.f32 %v758_v55, %v1173_v18 }
  0xb2   :  { %777 = vrot.lane.b32.xlu2 %v768_v57, %s1089_s21  ;;  %326 = vrot.lane.b32.xlu0 %v1117_v2, %s1088_s1 }
  0xb3   :  { %775 = vrot.lane.b32.xlu1 %v1260_v56, %s1089_s21 }
  0xb7   :  { %v762_v58 = vpop.permute.xlu0 %761  ;;  %v1309_v3 = vpop.permute.xlu1 %150 }
  0xb8   :  { %v1269_v59 = vadd.f32 %v762_v58, %v1181_v19 }
  0xba   :  { %499 = vrot.lane.b32.xlu2 %v1121_v5, %s1088_s1  ;;  %501 = vrot.lane.b32.xlu0 %v1147_v12, %s1088_s1 }
  0xbb   :  { %781 = vrot.lane.b32.xlu1 %v1269_v59, %s1089_s21 }
  0xbf   :  { %v1302_v0 = vpop.permute.xlu0 %148  ;;  %v1318_v7 = vpop.permute.xlu1 %322 }
  0xc2   :  { %672 = vrot.lane.b32.xlu2 %v1127_v8, %s1088_s1  ;;  %674 = vrot.lane.b32.xlu0 %v1160_v15, %s1088_s1 }
  0xc3   :  { %328 = vrot.lane.b32.xlu1 %v1135_v10, %s1088_s1 }
  0xc7   :  { %v1311_v4 = vpop.permute.xlu0 %154 }
  0xca   :  { %678 = vrot.lane.b32.xlu2 %v1139_v11, %s1088_s1 }
  0xcb   :  { %497 = vrot.lane.b32.xlu1 %v1133_v9, %s1088_s1 }
  0xd2   :  { %847 = vrot.lane.b32.xlu2 %v1171_v17, %s1088_s1 }
  0xd3   :  { %503 = vrot.lane.b32.xlu1 %v1149_v13, %s1088_s1 }
  0xdb   :  { %676 = vrot.lane.b32.xlu1 %v1164_v16, %s1088_s1 }
  0xdc   :  { %v77_v62 = vpop.permute.xlu2 %76 }
  0xdd   :  { %v1298_v63 = vadd.f32 %v77_v62, %v1191_v24 }
  0xdf   :  { %96 = vrot.lane.b32.xlu2 %v1298_v63, %s1090_s22 }
  0xe4   :  { %v79_v1 = vpop.permute.xlu2 %78 }
  0xe5   :  { %v1305_v2 = vadd.f32 %v79_v1, %v1202_v30 }
  0xe7   :  { %98 = vrot.lane.b32.xlu0 %v1305_v2, %s1090_s22 }
  0xec   :  { %v253_v5 = vpop.permute.xlu2 %252 }
  0xed   :  { %v1314_v6 = vadd.f32 %v253_v5, %v1213_v35 }
  0xef   :  { %272 = vrot.lane.b32.xlu0 %v1314_v6, %s1090_s22 }
  0xf4   :  { %v81_v8 = vpop.permute.xlu0 %80  ;;  %v426_v9 = vpop.permute.xlu2 %425 }
  0xf5   :  { %v1321_v10 = vadd.f32 %v81_v8, %v1189_v23  ;;  %v1323_v11 = vadd.f32 %v426_v9, %v417_v41 }
  0xf7   :  { %100 = vrot.lane.b32.xlu1 %v1321_v10, %s1090_s22  ;;  %445 = vrot.lane.b32.xlu0 %v1323_v11, %s1090_s22 }
  0xfc   :  { %v255_v12 = vpop.permute.xlu0 %254  ;;  %v432_v13 = vpop.permute.xlu2 %431 }
  0xfd   :  { %v1330_v15 = vadd.f32 %v255_v12, %v1198_v26  ;;  %v1332_v16 = vadd.f32 %v432_v13, %v420_v47  ;;  %v83_v17 = vpop.permute.xlu1 %82 }
  0xfe   :  { %v91_v20 = vadd.f32 %v83_v17, %v1200_v29 }
  0xff   :  { %274 = vrot.lane.b32.xlu1 %v1330_v15, %s1090_s22  ;;  %451 = vrot.lane.b32.xlu0 %v1332_v16, %s1090_s22 }
 0x100   :  { %102 = vrot.lane.b32.xlu2 %v91_v20, %s1090_s22 }
 0x104   :  { %v428_v21 = vpop.permute.xlu0 %427  ;;  %v605_v22 = vpop.permute.xlu2 %604 }
 0x105   :  { %v1341_v23 = vadd.f32 %v428_v21, %v1211_v31  ;;  %v1343_v24 = vadd.f32 %v605_v22, %v594_v53  ;;  %v251_v25 = vpop.permute.xlu1 %250 }
 0x106   :  { %v262_v26 = vadd.f32 %v251_v25, %v1215_v36 }
 0x107   :  { %447 = vrot.lane.b32.xlu1 %v1341_v23, %s1090_s22  ;;  %624 = vrot.lane.b32.xlu0 %v1343_v24, %s1090_s22 }
 0x108   :  { %270 = vrot.lane.b32.xlu2 %v262_v26, %s1090_s22 }
 0x10c   :  { %v601_v27 = vpop.permute.xlu0 %600  ;;  %v778_v28 = vpop.permute.xlu2 %777 }
 0x10d   :  { %v1352_v29 = vadd.f32 %v601_v27, %v1224_v37  ;;  %v1354_v30 = vadd.f32 %v778_v28, %v768_v57  ;;  %v257_v31 = vpop.permute.xlu1 %256 }
 0x10e   :  { %v265_v32 = vadd.f32 %v257_v31, %v1227_v40 }
 0x10f   :  { %620 = vrot.lane.b32.xlu1 %v1352_v29, %s1090_s22  ;;  %797 = vrot.lane.b32.xlu0 %v1354_v30, %s1090_s22 }
 0x110   :  { %276 = vrot.lane.b32.xlu2 %v265_v32, %s1090_s22 }
 0x114   :  { %v607_v33 = vpop.permute.xlu0 %606  ;;  %v1362_v34 = vpop.permute.xlu2 %499 }
 0x115   :  { %v1365_v35 = vadd.f32 %v607_v33, %v1236_v43  ;;  %v430_v36 = vpop.permute.xlu1 %429 }
 0x116   :  { %v1368_v37 = vadd.f32 %v430_v36, %v1239_v46 }
 0x117   :  { %626 = vrot.lane.b32.xlu1 %v1365_v35, %s1090_s22 }
 0x118   :  { %449 = vrot.lane.b32.xlu2 %v1368_v37, %s1090_s22 }
 0x11c   :  { %v780_v38 = vpop.permute.xlu0 %779  ;;  %v1374_v39 = vpop.permute.xlu2 %672 }
 0x11d   :  { %v1377_v40 = vadd.f32 %v780_v38, %v1248_v49  ;;  %v603_v41 = vpop.permute.xlu1 %602 }
 0x11e   :  { %v1380_v42 = vadd.f32 %v603_v41, %v1251_v52 }
 0x11f   :  { %799 = vrot.lane.b32.xlu1 %v1377_v40, %s1090_s22 }
 0x120   :  { %622 = vrot.lane.b32.xlu2 %v1380_v42, %s1090_s22 }
 0x124   :  { %v1386_v44 = vpop.permute.xlu2 %678  ;;  %v1403_v51 = vpop.permute.xlu0 %326 }
 0x125   :  { %v776_v43 = vpop.permute.xlu1 %775 }
 0x126   :  { %v1389_v45 = vadd.f32 %v776_v43, %v1260_v56 }
 0x128   :  { %795 = vrot.lane.b32.xlu2 %v1389_v45, %s1090_s22 }
 0x12c   :  { %v1396_v48 = vpop.permute.xlu2 %847  ;;  %v1409_v53 = vpop.permute.xlu0 %501 }
 0x12d   :  { %v782_v46 = vpop.permute.xlu1 %781 }
 0x12e   :  { %v1394_v47 = vadd.f32 %v782_v46, %v1269_v59 }
 0x130   :  { %801 = vrot.lane.b32.xlu2 %v1394_v47, %s1090_s22 }
 0x134   :  { %v1413_v55 = vpop.permute.xlu0 %674 }
 0x135   :  { %v1407_v52 = vpop.permute.xlu1 %328 }
 0x139   :  { %v97_v49 = vpop.permute.xlu2 %96 }
 0x13a   :  { %v1401_v50 = vadd.f32 %v97_v49, %v1298_v63 }
 0x13c   :  { %116 = vrot.lane.b32.xlu0 %v1401_v50, %s1091_s23 }
 0x13d   :  { %v1411_v54 = vpop.permute.xlu1 %497 }
 0x145   :  { %v1415_v56 = vpop.permute.xlu1 %503 }
 0x14d   :  { %v1426_v63 = vpop.permute.xlu1 %676 }
 0x159   :  { %v99_v57 = vpop.permute.xlu0 %98 }
 0x15a   :  { %v1418_v58 = vadd.f32 %v99_v57, %v1305_v2  ;;  %v103_v59 = vpop.permute.xlu2 %102 }
 0x15b   :  { %v1420_v62 = vadd.f32 %v103_v59, %v91_v20 }
 0x15c   :  { %118 = vrot.lane.b32.xlu1 %v1418_v58, %s1091_s23 }
 0x15d   :  { %122 = vrot.lane.b32.xlu0 %v1420_v62, %s1091_s23 }
 0x161   :  { %v273_v13 = vpop.permute.xlu0 %272 }
 0x162   :  { %v271_v1 = vpop.permute.xlu2 %270  ;;  %v1442_v20 = vadd.f32 %v273_v13, %v1314_v6 }
 0x163   :  { %v1428_v5 = vadd.f32 %v271_v1, %v262_v26 }
 0x165   :  { %290 = vrot.lane.b32.xlu1 %v1428_v5, %s1091_s23 }
 0x169   :  { %v101_v8 = vpop.permute.xlu1 %100 }
 0x16a   :  { %v277_v2 = vpop.permute.xlu2 %276  ;;  %v1433_v9 = vadd.f32 %v101_v8, %v1321_v10  ;;  %v446_v10 = vpop.permute.xlu0 %445 }
 0x16b   :  { %v1435_v12 = vadd.f32 %v277_v2, %v265_v32  ;;  %v1460_v6 = vadd.f32 %v446_v10, %v1323_v11 }
 0x16c   :  { %120 = vrot.lane.b32.xlu2 %v1433_v9, %s1091_s23 }
 0x16d   :  { %296 = vrot.lane.b32.xlu1 %v1435_v12, %s1091_s23 }
 0x171   :  { %v275_v17 = vpop.permute.xlu1 %274 }
 0x172   :  { %v1445_v21 = vadd.f32 %v275_v17, %v1330_v15  ;;  %v452_v15 = vpop.permute.xlu0 %451  ;;  %v450_v11 = vpop.permute.xlu2 %449 }
 0x173   :  { %v1469_v22 = vadd.f32 %v452_v15, %v1332_v16  ;;  %v1478_v27 = vadd.f32 %v450_v11, %v1368_v37 }
 0x174   :  { %292 = vrot.lane.b32.xlu2 %v1442_v20, %s1091_s23  ;;  %294 = vrot.lane.b32.xlu0 %v1445_v21, %s1091_s23 }
 0x175   :  { %136 = vrot.lane.b32.xlu1 %v1433_v9, %s1092_s24 }
 0x179   :  { %v448_v25 = vpop.permute.xlu1 %447 }
 0x17a   :  { %v625_v26 = vpop.permute.xlu0 %624  ;;  %v1481_v28 = vadd.f32 %v448_v25, %v1341_v23  ;;  %v623_v32 = vpop.permute.xlu2 %622 }
 0x17b   :  { %v1484_v16 = vadd.f32 %v625_v26, %v1343_v24  ;;  %v1493_v33 = vadd.f32 %v623_v32, %v1380_v42 }
 0x17c   :  { %132 = vrot.lane.b32.xlu2 %v1401_v50, %s1092_s24  ;;  %134 = vrot.lane.b32.xlu0 %v1418_v58, %s1092_s24 }
 0x17d   :  { %308 = vrot.lane.b32.xlu1 %v1442_v20, %s1092_s24 }
 0x181   :  { %v621_v31 = vpop.permute.xlu1 %620 }
 0x182   :  { %v1496_v23 = vadd.f32 %v621_v31, %v1352_v29  ;;  %v798_v29 = vpop.permute.xlu0 %797 }
 0x183   :  { %v1514_v37 = vadd.f32 %v798_v29, %v1354_v30 }
 0x184   :  { %138 = vrot.lane.b32.xlu2 %v1420_v62, %s1092_s24  ;;  %306 = vrot.lane.b32.xlu0 %v1428_v5, %s1092_s24 }
 0x185   :  { %465 = vrot.lane.b32.xlu1 %v1460_v6, %s1091_s23 }
 0x189   :  { %v627_v24 = vpop.permute.xlu1 %626 }
 0x18a   :  { %v1505_v36 = vadd.f32 %v627_v24, %v1365_v35  ;;  %v796_v35 = vpop.permute.xlu2 %795 }
 0x18b   :  { %v1523_v38 = vadd.f32 %v796_v35, %v1389_v45 }
 0x18c   :  { %310 = vrot.lane.b32.xlu2 %v1445_v21, %s1092_s24  ;;  %312 = vrot.lane.b32.xlu0 %v1435_v12, %s1092_s24 }
 0x18d   :  { %471 = vrot.lane.b32.xlu1 %v1469_v22, %s1091_s23 }
 0x191   :  { %v800_v42 = vpop.permute.xlu1 %799 }
 0x192   :  { %v802_v30 = vpop.permute.xlu2 %801  ;;  %v1541_v43 = vadd.f32 %v800_v42, %v1377_v40 }
 0x193   :  { %v1532_v41 = vadd.f32 %v802_v30, %v1394_v47 }
 0x194   :  { %469 = vrot.lane.b32.xlu0 %v1478_v27, %s1091_s23  ;;  %467 = vrot.lane.b32.xlu2 %v1481_v28, %s1091_s23 }
 0x195   :  { %644 = vrot.lane.b32.xlu1 %v1484_v16, %s1091_s23 }
 0x19c   :  { %642 = vrot.lane.b32.xlu0 %v1493_v33, %s1091_s23  ;;  %640 = vrot.lane.b32.xlu2 %v1496_v23, %s1091_s23 }
 0x19d   :  { %485 = vrot.lane.b32.xlu1 %v1478_v27, %s1092_s24 }
 0x1a4   :  { %483 = vrot.lane.b32.xlu0 %v1481_v28, %s1092_s24  ;;  %646 = vrot.lane.b32.xlu2 %v1505_v36, %s1091_s23 }
 0x1a5   :  { %658 = vrot.lane.b32.xlu1 %v1493_v33, %s1092_s24 }
 0x1ac   :  { %656 = vrot.lane.b32.xlu0 %v1496_v23, %s1092_s24  ;;  %481 = vrot.lane.b32.xlu2 %v1460_v6, %s1092_s24 }
 0x1ad   :  { %817 = vrot.lane.b32.xlu1 %v1514_v37, %s1091_s23 }
 0x1ae   :  { %v117_v40 = vpop.permute.xlu0 %116 }
 0x1af   :  { %v128_v49 = vadd.f32 %v117_v40, %v1401_v50 }
 0x1b4   :  { %662 = vrot.lane.b32.xlu0 %v1505_v36, %s1092_s24  ;;  %487 = vrot.lane.b32.xlu2 %v1469_v22, %s1092_s24 }
 0x1b5   :  { %831 = vrot.lane.b32.xlu1 %v1523_v38, %s1092_s24 }
 0x1bc   :  { %815 = vrot.lane.b32.xlu0 %v1523_v38, %s1091_s23  ;;  %660 = vrot.lane.b32.xlu2 %v1484_v16, %s1092_s24 }
 0x1bd   :  { %837 = vrot.lane.b32.xlu1 %v1532_v41, %s1092_s24 }
 0x1c4   :  { %821 = vrot.lane.b32.xlu0 %v1532_v41, %s1091_s23  ;;  %819 = vrot.lane.b32.xlu2 %v1541_v43, %s1091_s23 }
 0x1c5   :  { %851 = vrot.lane.b32.xlu1 %v1152_v14, %s1088_s1 }
 0x1c6   :  { %v121_v45 = vpop.permute.xlu2 %120 }
 0x1cc   :  { %835 = vrot.lane.b32.xlu0 %v1541_v43, %s1092_s24  ;;  %833 = vrot.lane.b32.xlu2 %v1514_v37, %s1092_s24 }
 0x1ce   :  { %v293_v46 = vpop.permute.xlu2 %292  ;;  %v119_v47 = vpop.permute.xlu1 %118 }
 0x1cf   :  { %v123_v1 = vpop.permute.xlu0 %122  ;;  %v303_v35 = vadd.f32 %v293_v46, %v1442_v20 }
 0x1d0   :  { %v131_v8 = vadd.f32 %v123_v1, %v1420_v62 }
 0x1d4   :  { %849 = vrot.lane.b32.xlu0 %v1173_v18, %s1088_s1  ;;  %853 = vrot.lane.b32.xlu2 %v1181_v19, %s1088_s1  ;;  %v130_v18 = vadd.f32 %v121_v45, %v1433_v9 }
 0x1d6   :  { %v133_v57 = vpop.permute.xlu2 %132 }
 0x1d7   :  { %v144_v14 = vadd.f32 %v133_v57, %v128_v49  ;;  %v291_v59 = vpop.permute.xlu1 %290 }
 0x1de   :  { %v139_v2 = vpop.permute.xlu2 %138 }
 0x1df   :  { %v147_v13 = vadd.f32 %v139_v2, %v131_v8  ;;  %v297_v17 = vpop.permute.xlu1 %296 }
 0x1e1   :  { %v1560_v10 = vadd.f32 %v1311_v4, %v147_v13  ;;  %v129_v4 = vadd.f32 %v119_v47, %v1418_v58 }
 0x1e3   :  { %v174_v15 = vrot.slane %v1560_v10, 1 }
 0x1e5   :  { %v183_v31 = vadd.f32 %v174_v15, %v1560_v10 }
 0x1e6   :  { %v311_v25 = vpop.permute.xlu2 %310  ;;  %v295_v19 = vpop.permute.xlu0 %294 }
 0x1e7   :  { %v137_v11 = vpop.permute.xlu1 %136  ;;  %v304_v50 = vadd.f32 %v295_v19, %v1445_v21  ;;  %v194_v29 = vrot.slane %v183_v31, 2  ;;  %v160_v21 = vadd.f32 %v1302_v0, %v144_v14 }
 0x1e8   :  { %v146_v26 = vadd.f32 %v137_v11, %v130_v18 }
 0x1e9   :  { %v320_v32 = vadd.f32 %v311_v25, %v304_v50  ;;  %v203_v1 = vadd.f32 %v194_v29, %v183_v31  ;;  %v169_v46 = vrot.slane %v160_v21, 1 }
 0x1ea   :  { %v162_v62 = vadd.f32 %v1283_v60, %v146_v26 }
 0x1eb   :  { %v336_v60 = vadd.f32 %v1403_v51, %v320_v32  ;;  %v214_v18 = vrot.slane %v203_v1, 4 }
 0x1ec   :  { %v172_v24 = vrot.slane %v162_v62, 1 }
 0x1ed   :  { %v345_v13 = vrot.slane %v336_v60, 1 }
 0x1ee   :  { %v175_v9 = vsel %vm168_vm0, %v172_v24, %v174_v15  ;;  %v135_v30 = vpop.permute.xlu0 %134  ;;  %v1570_v42 = vpop.permute.xlu2 %467  ;;  %v302_v15 = vadd.f32 %v291_v59, %v1428_v5 }
 0x1ef   :  { %v182_v45 = vadd.f32 %v175_v9, %v162_v62  ;;  %v145_v40 = vadd.f32 %v135_v30, %v129_v4  ;;  %v309_v49 = vpop.permute.xlu1 %308 }
 0x1f0   :  { %v319_v57 = vadd.f32 %v309_v49, %v303_v35 }
 0x1f1   :  { %v192_v8 = vrot.slane %v182_v45, 2  ;;  %v161_v58 = vadd.f32 %v1309_v3, %v145_v40  ;;  %v305_v40 = vadd.f32 %v297_v17, %v1435_v12 }
 0x1f2   :  { %v335_v20 = vadd.f32 %v1289_v61, %v319_v57 }
 0x1f3   :  { %v195_v47 = vsel %vm188_vm1, %v192_v8, %v194_v29  ;;  %v170_v2 = vrot.slane %v161_v58, 1 }
 0x1f4   :  { %v202_v0 = vadd.f32 %v195_v47, %v182_v45  ;;  %v343_v14 = vrot.slane %v335_v20, 1 }
 0x1f5   :  { %v171_v51 = vsel %vm168_vm0, %v169_v46, %v170_v2  ;;  %v173_v25 = vsel %vm168_vm0, %v170_v2, %v172_v24 }
 0x1f6   :  { %v212_v19 = vrot.slane %v202_v0, 4  ;;  %v180_v11 = vadd.f32 %v171_v51, %v160_v21  ;;  %v181_v3 = vadd.f32 %v173_v25, %v161_v58  ;;  %v346_v61 = vsel %vm168_vm0, %v343_v14, %v345_v13  ;;  %v307_v50 = vpop.permute.xlu0 %306  ;;  %v1581_v26 = vpop.permute.xlu2 %640 }
 0x1f7   :  { %v354_v31 = vadd.f32 %v346_v61, %v335_v20  ;;  %v318_v62 = vadd.f32 %v307_v50, %v302_v15  ;;  %v466_v32 = vpop.permute.xlu1 %465 }
 0x1f8   :  { %v215_v4 = vsel %vm208_vm2, %v212_v19, %v214_v18  ;;  %v189_v29 = vrot.slane %v180_v11, 2  ;;  %v190_v5 = vrot.slane %v181_v3, 2 }
 0x1f9   :  { %v221_v59 = vadd.f32 %v215_v4, %v202_v0  ;;  %v334_v35 = vadd.f32 %v1318_v7, %v318_v62  ;;  %v362_v18 = vrot.slane %v354_v31, 2 }
 0x1fa   :  { %v191_v24 = vsel %vm188_vm1, %v189_v29, %v190_v5  ;;  %v193_v9 = vsel %vm188_vm1, %v190_v5, %v192_v8 }
 0x1fb   :  { %v200_v30 = vadd.f32 %v191_v24, %v180_v11  ;;  %v201_v21 = vadd.f32 %v193_v9, %v181_v3  ;;  %v342_v45 = vrot.slane %v334_v35, 1 }
 0x1fd   :  { %v209_v49 = vrot.slane %v200_v30, 4  ;;  %v210_v57 = vrot.slane %v201_v21, 4  ;;  %v344_v1 = vsel %vm168_vm0, %v342_v45, %v343_v14 }
 0x1fe   :  { %v353_v58 = vadd.f32 %v344_v1, %v334_v35  ;;  %v313_v20 = vpop.permute.xlu0 %312  ;;  %v1589_v46 = vpop.permute.xlu2 %646 }
 0x1ff   :  { %v211_v47 = vsel %vm208_vm2, %v209_v49, %v210_v57  ;;  %v213_v7 = vsel %vm208_vm2, %v210_v57, %v212_v19  ;;  %v321_v2 = vadd.f32 %v313_v20, %v305_v40  ;;  %v472_v0 = vpop.permute.xlu1 %471 }
 0x200   :  { %v219_v8 = vadd.f32 %v211_v47, %v200_v30  ;;  %v220_v15 = vadd.f32 %v213_v7, %v201_v21  ;;  %v361_v51 = vrot.slane %v353_v58, 2  ;;  %v480_v57 = vadd.f32 %v472_v0, %v1469_v22 }
 0x201   :  { %v337_v12 = vadd.f32 %v1407_v52, %v321_v2 }
 0x202   :  { %v222_v17 = vadd.f32 %v220_v15, %v219_v8  ;;  %v363_v25 = vsel %vm188_vm1, %v361_v51, %v362_v18 }
 0x203   :  { %v372_v14 = vadd.f32 %v363_v25, %v353_v58  ;;  %v347_v11 = vrot.slane %v337_v12, 1 }
 0x204   :  { %v223_v3 = vadd.f32 %v222_v17, %v221_v59 }
 0x205   :  { %v348_v61 = vsel %vm168_vm0, %v345_v13, %v347_v11  ;;  %v356_v50 = vadd.f32 %v347_v11, %v337_v12  ;;  %v380_v40 = vrot.slane %v372_v14, 4 }
 0x206   :  { %v224_v62 = vadd.f32 %v223_v3, %v1560_v10  ;;  %v355_v19 = vadd.f32 %v348_v61, %v336_v60  ;;  %v470_v4 = vpop.permute.xlu0 %469  ;;  %v482_v29 = vpop.permute.xlu2 %481 }
 0x207   :  { %v366_v5 = vrot.slane %v356_v50, 2  ;;  %v645_v35 = vpop.permute.xlu1 %644  ;;  %v479_v47 = vadd.f32 %v470_v4, %v1478_v27  ;;  %v478_v27 = vadd.f32 %v1570_v42, %v1481_v28 }
 0x208   :  { %v364_v24 = vrot.slane %v355_v19, 2  ;;  %v225_v61 = vmul.f32 0.0016, %v224_v62 }
 0x209   :  { %v375_v9 = vadd.f32 %v366_v5, %v356_v50 }
 0x20a   :  { %v365_v52 = vsel %vm188_vm1, %v362_v18, %v364_v24  ;;  %v367_v30 = vsel %vm188_vm1, %v364_v24, %v366_v5  ;;  %v477_v18 = vadd.f32 %v466_v32, %v1460_v6 }
 0x20b   :  { %v373_v21 = vadd.f32 %v365_v52, %v354_v31  ;;  %v374_v45 = vadd.f32 %v367_v30, %v355_v19  ;;  %v385_v13 = vrot.slane %v375_v9, 4  ;;  %v654_v19 = vadd.f32 %v645_v35, %v1484_v16 }
 0x20c   :  { %v493_v0 = vadd.f32 %v482_v29, %v477_v18  ;;  %v931_v52 = vmul.f32 2.0, %v225_v61  ;;  %v1618_v16 = vmul.f32 %v225_v61, %v225_v61 }
 0x20d   :  { %v381_v59 = vrot.slane %v373_v21, 4  ;;  %v383_v49 = vrot.slane %v374_v45, 4 }
 0x20e   :  { %v643_v10 = vpop.permute.xlu0 %642  ;;  %v488_v60 = vpop.permute.xlu2 %487  ;;  %v509_v4 = vadd.f32 %v1411_v54, %v493_v0  ;;  %v655_v0 = vadd.f32 %v1589_v46, %v1505_v36 }
 0x20f   :  { %v382_v1 = vsel %vm208_vm2, %v380_v40, %v381_v59  ;;  %v384_v58 = vsel %vm208_vm2, %v381_v59, %v383_v49  ;;  %v386_v20 = vsel %vm208_vm2, %v383_v49, %v385_v13  ;;  %v486_v7 = vpop.permute.xlu1 %485  ;;  %v496_v15 = vadd.f32 %v488_v60, %v480_v57 }
 0x210   :  { %v390_v2 = vadd.f32 %v382_v1, %v372_v14  ;;  %v391_v31 = vadd.f32 %v384_v58, %v373_v21  ;;  %v392_v8 = vadd.f32 %v386_v20, %v374_v45  ;;  %v495_v51 = vadd.f32 %v486_v7, %v479_v47 }
 0x211   :  { %v1606_v22 = vadd.f32 %v1415_v56, %v496_v15  ;;  %v653_v56 = vadd.f32 %v643_v10, %v1493_v33  ;;  %v517_v54 = vrot.slane %v509_v4, 1  ;;  %v652_v45 = vadd.f32 %v1581_v26, %v1496_v23 }
 0x212   :  { %v393_v17 = vadd.f32 %v391_v31, %v390_v2  ;;  %v511_v25 = vadd.f32 %v1409_v53, %v495_v51 }
 0x213   :  { %v522_v3 = vrot.slane %v1606_v22, 1 }
 0x214   :  { %v394_v11 = vadd.f32 %v393_v17, %v392_v8  ;;  %v520_v14 = vrot.slane %v511_v25, 1 }
 0x215   :  { %v531_v62 = vadd.f32 %v522_v3, %v1606_v22 }
 0x216   :  { %v395_v50 = vadd.f32 %v394_v11, %v337_v12  ;;  %v484_v6 = vpop.permute.xlu0 %483  ;;  %v661_v32 = vpop.permute.xlu2 %660  ;;  %v523_v29 = vsel %vm168_vm0, %v520_v14, %v522_v3 }
 0x217   :  { %v494_v53 = vadd.f32 %v484_v6, %v478_v27  ;;  %v659_v5 = vpop.permute.xlu1 %658  ;;  %v530_v9 = vadd.f32 %v523_v29, %v511_v25  ;;  %v670_v42 = vadd.f32 %v661_v32, %v654_v19  ;;  %v541_v40 = vrot.slane %v531_v62, 2 }
 0x218   :  { %v396_v24 = vmul.f32 0.0016, %v395_v50  ;;  %v669_v12 = vadd.f32 %v659_v5, %v653_v56 }
 0x219   :  { %v510_v28 = vadd.f32 %v1362_v34, %v494_v53  ;;  %v539_v59 = vrot.slane %v530_v9, 2  ;;  %v686_v57 = vadd.f32 %v1426_v63, %v670_v42  ;;  %v550_v32 = vadd.f32 %v541_v40, %v531_v62 }
 0x21a   :  { %v1620_v35 = vmul.f32 %v396_v24, %v396_v24  ;;  %v1622_v33 = vmul.f32 %v396_v24, %v225_v61  ;;  %v1624_v21 = vmul.f32 %v931_v52, %v396_v24  ;;  %v685_v10 = vadd.f32 %v1413_v55, %v669_v12 }
 0x21b   :  { %v518_v30 = vrot.slane %v510_v28, 1  ;;  %v542_v23 = vsel %vm188_vm1, %v539_v59, %v541_v40  ;;  %v695_v7 = vrot.slane %v686_v57, 1 }
 0x21c   :  { %v1630_v34 = vadd.f32 %v1620_v35, %v1618_v16  ;;  %v693_v2 = vrot.slane %v685_v10, 1  ;;  %v549_v63 = vadd.f32 %v542_v23, %v530_v9 }
 0x21d   :  { %v519_v49 = vsel %vm168_vm0, %v517_v54, %v518_v30  ;;  %v521_v13 = vsel %vm168_vm0, %v518_v30, %v520_v14 }
 0x21e   :  { %v528_v60 = vadd.f32 %v519_v49, %v509_v4  ;;  %v529_v1 = vadd.f32 %v521_v13, %v510_v28  ;;  %v657_v58 = vpop.permute.xlu0 %656  ;;  %v696_v3 = vsel %vm168_vm0, %v693_v2, %v695_v7  ;;  %v558_v14 = vrot.slane %v549_v63, 4  ;;  %v820_v50 = vpop.permute.xlu2 %819 }
 0x21f   :  { %v668_v20 = vadd.f32 %v657_v58, %v652_v45  ;;  %v1640_v18 = vpop.permute.xlu1 %817  ;;  %v704_v6 = vadd.f32 %v696_v3, %v685_v10  ;;  %v560_v28 = vrot.slane %v550_v32, 4 }
 0x220   :  { %v536_v26 = vrot.slane %v528_v60, 2  ;;  %v537_v47 = vrot.slane %v529_v1, 2 }
 0x221   :  { %v684_v31 = vadd.f32 %v1374_v39, %v668_v20  ;;  %v712_v24 = vrot.slane %v704_v6, 2  ;;  %v561_v30 = vsel %vm208_vm2, %v558_v14, %v560_v28  ;;  %v828_v28 = vadd.f32 %v1640_v18, %v1514_v37 }
 0x222   :  { %v538_v8 = vsel %vm188_vm1, %v536_v26, %v537_v47  ;;  %v540_v15 = vsel %vm188_vm1, %v537_v47, %v539_v59  ;;  %v567_v10 = vadd.f32 %v561_v30, %v549_v63 }
 0x223   :  { %v547_v55 = vadd.f32 %v538_v8, %v528_v60  ;;  %v548_v51 = vadd.f32 %v540_v15, %v529_v1  ;;  %v692_v17 = vrot.slane %v684_v31, 1 }
 0x225   :  { %v555_v25 = vrot.slane %v547_v55, 4  ;;  %v556_v11 = vrot.slane %v548_v51, 4  ;;  %v694_v61 = vsel %vm168_vm0, %v692_v17, %v693_v2 }
 0x226   :  { %v703_v39 = vadd.f32 %v694_v61, %v684_v31  ;;  %v663_v27 = vpop.permute.xlu0 %662  ;;  %v834_v13 = vpop.permute.xlu2 %833 }
 0x227   :  { %v671_v19 = vadd.f32 %v663_v27, %v655_v0  ;;  %v557_v4 = vsel %vm208_vm2, %v555_v25, %v556_v11  ;;  %v559_v56 = vsel %vm208_vm2, %v556_v11, %v558_v14  ;;  %v832_v9 = vpop.permute.xlu1 %831 }
 0x228   :  { %v711_v36 = vrot.slane %v703_v39, 2  ;;  %v565_v53 = vadd.f32 %v557_v4, %v547_v55  ;;  %v566_v5 = vadd.f32 %v559_v56, %v548_v51 }
 0x229   :  { %v687_v29 = vadd.f32 %v1386_v44, %v671_v19  ;;  %v829_v19 = vadd.f32 %v820_v50, %v1541_v43 }
 0x22a   :  { %v713_v52 = vsel %vm188_vm1, %v711_v36, %v712_v24  ;;  %v568_v40 = vadd.f32 %v566_v5, %v565_v53 }
 0x22b   :  { %v697_v46 = vrot.slane %v687_v29, 1  ;;  %v722_v44 = vadd.f32 %v713_v52, %v703_v39 }
 0x22c   :  { %v569_v23 = vadd.f32 %v568_v40, %v567_v10 }
 0x22d   :  { %v698_v42 = vsel %vm168_vm0, %v695_v7, %v697_v46  ;;  %v706_v12 = vadd.f32 %v697_v46, %v687_v29  ;;  %v730_v26 = vrot.slane %v722_v44, 4 }
 0x22e   :  { %v705_v54 = vadd.f32 %v698_v42, %v686_v57  ;;  %v816_v62 = vpop.permute.xlu0 %815  ;;  %v570_v51 = vadd.f32 %v569_v23, %v1606_v22  ;;  %v854_v25 = vpop.permute.xlu2 %853 }
 0x22f   :  { %v716_v45 = vrot.slane %v706_v12, 2  ;;  %v838_v2 = vpop.permute.xlu1 %837 }
 0x230   :  { %v714_v59 = vrot.slane %v705_v54, 2  ;;  %v571_v39 = vmul.f32 0.0016, %v570_v51 }
 0x231   :  { %v725_v49 = vadd.f32 %v716_v45, %v706_v12 }
 0x232   :  { %v715_v60 = vsel %vm188_vm1, %v712_v24, %v714_v59  ;;  %v717_v1 = vsel %vm188_vm1, %v714_v59, %v716_v45  ;;  %v923_v22 = vsub.f32 %v571_v39, %v1618_v16 }
 0x233   :  { %v723_v58 = vadd.f32 %v715_v60, %v704_v6  ;;  %v724_v20 = vadd.f32 %v717_v1, %v705_v54  ;;  %v735_v7 = vrot.slane %v725_v49, 4  ;;  %v827_v6 = vadd.f32 %v816_v62, %v1523_v38 }
 0x234   :  { %v924_v12 = vmul.f32 1.0016025, %v923_v22  ;;  %v844_v38 = vadd.f32 %v834_v13, %v828_v28  ;;  %v933_v22 = vadd.f32 0.0004, %v1624_v21 }
 0x235   :  { %v731_v47 = vrot.slane %v723_v58, 4  ;;  %v733_v57 = vrot.slane %v724_v20, 4  ;;  %v843_v53 = vadd.f32 %v832_v9, %v827_v6  ;;  %v937_v9 = vadd.f32 0.0004, %v1630_v34 }
 0x236   :  { %v822_v31 = vpop.permute.xlu0 %821 }
 0x237   :  { %v732_v8 = vsel %vm208_vm2, %v730_v26, %v731_v47  ;;  %v734_v15 = vsel %vm208_vm2, %v731_v47, %v733_v57  ;;  %v736_v55 = vsel %vm208_vm2, %v733_v57, %v735_v7  ;;  %v830_v63 = vadd.f32 %v822_v31, %v1532_v41  ;;  %v852_v56 = vpop.permute.xlu1 %851 }
 0x238   :  { %v740_v17 = vadd.f32 %v732_v8, %v722_v44  ;;  %v741_v0 = vadd.f32 %v734_v15, %v723_v58  ;;  %v742_v3 = vadd.f32 %v736_v55, %v724_v20 }
 0x239   :  { %v846_v11 = vadd.f32 %v838_v2, %v830_v63 }
 0x23a   :  { %v743_v61 = vadd.f32 %v741_v0, %v740_v17 }
 0x23b   :  { %v862_v14 = vadd.f32 %v854_v25, %v846_v11 }
 0x23c   :  { %v744_v27 = vadd.f32 %v743_v61, %v742_v3 }
 0x23d   :  { %v872_v46 = vrot.slane %v862_v14, 1 }
 0x23e   :  { %v745_v32 = vadd.f32 %v744_v27, %v687_v29  ;;  %v836_v4 = vpop.permute.xlu0 %835  ;;  %v859_v29 = vadd.f32 %v1396_v48, %v843_v53 }
 0x23f   :  { %v845_v36 = vadd.f32 %v836_v4, %v829_v19  ;;  %v881_v50 = vadd.f32 %v872_v46, %v862_v14 }
 0x240   :  { %v746_v41 = vmul.f32 0.0016, %v745_v32  ;;  %v867_v59 = vrot.slane %v859_v29, 1 }
 0x241   :  { %v861_v5 = vadd.f32 %v852_v56, %v845_v36 }
 0x242   :  { %v926_v24 = vsub.f32 %v746_v41, %v1620_v35  ;;  %v891_v35 = vrot.slane %v881_v50, 2 }
 0x243   :  { %v870_v42 = vrot.slane %v861_v5, 1 }
 0x244   :  { %v927_v43 = vmul.f32 1.0016025, %v926_v24  ;;  %v900_v20 = vadd.f32 %v891_v35, %v881_v50 }
 0x245   :  { %v873_v52 = vsel %vm168_vm0, %v870_v42, %v872_v46 }
 0x246   :  { %v938_v54 = vadd.f32 %v927_v43, %v924_v12  ;;  %v880_v62 = vadd.f32 %v873_v52, %v861_v5  ;;  %v850_v16 = vpop.permute.xlu0 %849  ;;  %v910_v2 = vrot.slane %v900_v20, 4 }
 0x247   :  { %v860_v30 = vadd.f32 %v850_v16, %v844_v38 }
 0x248   :  { %v939_v45 = vadd.f32 0.0036, %v938_v54  ;;  %v889_v40 = vrot.slane %v880_v62, 2 }
 0x249   :  { %v868_v37 = vrot.slane %v860_v30, 1 }
 0x24a   :  { %v941_v18 = vmul.f32 %v939_v45, %v937_v9  ;;  %v892_v44 = vsel %vm188_vm1, %v889_v40, %v891_v35 }
 0x24b   :  { %v869_v49 = vsel %vm168_vm0, %v867_v59, %v868_v37  ;;  %v871_v48 = vsel %vm168_vm0, %v868_v37, %v870_v42  ;;  %v899_v60 = vadd.f32 %v892_v44, %v880_v62 }
 0x24c   :  { %v878_v13 = vadd.f32 %v869_v49, %v859_v29  ;;  %v879_v10 = vadd.f32 %v871_v48, %v860_v30  ;;  %1003 = vrcp.f32 %v941_v18  ;;  %v953_v56 = vand.u32 2147483648, %v941_v18 }
 0x24d   :  { %v908_v26 = vrot.slane %v899_v60, 4  ;;  %vm947_vm4 = vweird.f32 %v941_v18  ;;  %v951_v41 = vand.u32 2147483647, %v941_v18 }
 0x24e   :  { %v886_v1 = vrot.slane %v878_v13, 2  ;;  %v887_v58 = vrot.slane %v879_v10, 2  ;;  %v954_v5 = vor.u32 1.1754944e-38, %v953_v56 }
 0x24f   :  { %v911_v15 = vsel %vm208_vm2, %v908_v26, %v910_v2  ;;  %vm952_vm6 = vcmp.eq.f32.partialorder %v951_v41, 8.507059e+37 }
 0x250   :  { %v888_v34 = vsel %vm188_vm1, %v886_v1, %v887_v58  ;;  %v890_v23 = vsel %vm188_vm1, %v887_v58, %v889_v40  ;;  %v917_v25 = vadd.f32 %v911_v15, %v899_v60 }
 0x251   :  { %v897_v47 = vadd.f32 %v888_v34, %v878_v13  ;;  %v898_v57 = vadd.f32 %v890_v23, %v879_v10 }
 0x252   :  { %v1004_v7 = vpop.eup %1003 }
 0x253   :  { %v905_v31 = vrot.slane %v897_v47, 4  ;;  %v906_v8 = vrot.slane %v898_v57, 4  ;;  %v943_v0 = vmul.f32 %v1004_v7, %v941_v18  ;;  %vm948_vm3 = vweird.f32 %v1004_v7 }
 0x254   :  { %vm949_vm5 = vmor %vm947_vm4, %vm948_vm3 }
 0x255   :  { %v907_v55 = vsel %vm208_vm2, %v905_v31, %v906_v8  ;;  %v909_v63 = vsel %vm208_vm2, %v906_v8, %v908_v26  ;;  %v944_v61 = vsub.f32 1.0, %v943_v0 }
 0x256   :  { %v915_v51 = vadd.f32 %v907_v55, %v897_v47  ;;  %v916_v17 = vadd.f32 %v909_v63, %v898_v57 }
 0x257   :  { %v945_v19 = vmul.f32 %v1004_v7, %v944_v61 }
 0x258   :  { %v918_v11 = vadd.f32 %v916_v17, %v915_v51 }
 0x259   :  { %v946_v4 = vadd.f32 %v1004_v7, %v945_v19 }
 0x25a   :  { %v919_v3 = vadd.f32 %v918_v11, %v917_v25 }
 0x25b   :  { %v950_v53 = vsel %vm949_vm5, %v1004_v7, %v946_v4 }
 0x25c   :  { %v920_v39 = vadd.f32 %v919_v3, %v862_v14  ;;  %v955_v14 = vsel %vm952_vm6, %v954_v5, %v950_v53 }
 0x25e   :  { %v921_v27 = vmul.f32 0.0016, %v920_v39 }
 0x260   :  { %v929_v6 = vsub.f32 %v921_v27, %v1622_v33 }
 0x262   :  { %v930_v32 = vmul.f32 1.0016025, %v929_v6 }
 0x264   :  { %v934_v36 = vmul.f32 2.0, %v930_v32 }
 0x266   :  { %v935_v46 = vadd.f32 0.0036, %v934_v36 }
 0x268   :  { %v940_v24 = vmul.f32 %v935_v46, %v933_v22 }
 0x26a   :  { %v956_v28 = vmul.f32 %v955_v14, %v940_v24 }
 0x26c   :  { %v958_v42 = vsel %vm957_vm7, %v956_v28, 0.0 }
 0x26d   :  { %959 = vadd.xlane.f32.xlu0 %v958_v42 }
 0x2e0   :  { %v960_v33 = vpop.xlane.xlu0 %959 }
 0x2e1   :  { %v961_v12 = vrot.slane %v960_v33, 4 }
 0x2e3   :  { %v962_v43 = vadd.f32 %v961_v12, %v960_v33 }
 0x2e5   :  { %v963_v50 = vrot.slane %v962_v43, 2 }
 0x2e7   :  { %v964_v38 = vadd.f32 %v963_v50, %v962_v43 }
 0x2e9   :  { %v965_v29 = vrot.slane %v964_v38, 1 }
 0x2eb   :  { %v966_v52 = vadd.f32 %v965_v29, %v964_v38 }
 0x2ed   :  { %990 = vpush %v966_v52 }
 0x31e   :  { %s991_s30 = spop %990 }
 0x31f   :  { %v968_v21 = vstv %s991_s30 }
 0x320   :  { %v969_v54 = vmul.f32 0.015625, %v968_v21 }
 0x322   :  { %971 = vst.msk [vmem:[#allocation7] sm:$0x1] %vm970_vm8, %v969_v54 }
 0x323   :  { %982 = dma.vmem_to_hbm [thread:$0]  %s978_s26, 16, %s980_s29, [#allocation4]  }
 0x324   :  { %1081 = dma.done.wait [#allocation4], 16  }
 0x325   :  { %1082 = vsyncadd [#allocation4], 4294967280 }
 0x326   :  { %987 = vsyncpa [#allocation3], 1 }
 0x327   :  { %988 = vsyncpa [#allocation6], 1 }
 0x328   :  { %989 = vsyncpa [#allocation4], 1 }

</bundles_post_ra>
